<compile_context>
chip_gen: v5e
topology: v5e:2x2
jax: 0.10.0
libtpu: 0.0.40
codegen_flags: <defaults>
</compile_context>

<pallas_src>
from functools import partial

import jax
import jax.numpy as jnp
from jax.experimental import pallas as pl
from jax.experimental.pallas import tpu as pltpu


def _attention_kernel(x_ref, wqkv_ref, wproj_ref, bias_ref,   # inputs
                      out_ref, attn_ref,                        # outputs
                      *, num_heads, compute_dtype):
    """One grid step processes `bb` batch elements and ALL heads.

    x_ref:     (bb, N, C)      tokens
    wqkv_ref:  (C, 3C)         fused QKV weight, pre-transposed; softmax scale
                               already folded into the Q columns
    wproj_ref: (C, C)          output-projection weight, pre-transposed
    bias_ref:  (1, C)          output-projection bias
    out_ref:   (bb, N, C)      projected output
    attn_ref:  (bb, H, N, N)   full softmax attention maps (lane-dense; the
                               [1:, 1:] crop is done in the wrapper)
    """
    bb, N, C = x_ref.shape
    hd = C // num_heads
    dt = compute_dtype

    # ---- fused QKV projection: one lane-dense (bb*N, C) @ (C, 3C) matmul ----
    x2 = x_ref[...].reshape(bb * N, C).astype(dt)
    qkv = jnp.dot(x2, wqkv_ref[...].astype(dt),
                  preferred_element_type=jnp.float32)            # (bb*N, 3C) f32
    qkv = qkv.astype(dt)                                         # MXU operand dtype

    ctx_heads = []
    for h in range(num_heads):                                   # static unroll
        q_h = qkv[:, h * hd:(h + 1) * hd].reshape(bb, N, hd)
        k_h = qkv[:, C + h * hd:C + (h + 1) * hd].reshape(bb, N, hd)
        v_h = qkv[:, 2 * C + h * hd:2 * C + (h + 1) * hd].reshape(bb, N, hd)

        # Scores, batched over the bb batch elements; contraction on the head
        # dim -> no materialized transpose.  Scale is already inside Wq.
        s = jnp.einsum('bqd,bkd->bqk', q_h, k_h,
                       preferred_element_type=jnp.float32)       # (bb, N, N)

        # Numerically stable softmax in f32.  Denominator reciprocal on the
        # EUP (approx) + one Newton step instead of a VALU divide broadcast.
        s = s - jnp.max(s, axis=-1, keepdims=True)
        e = jnp.exp(s)
        denom = jnp.sum(e, axis=-1, keepdims=True)
        inv = pl.reciprocal(denom, approx=True)
        inv = inv * (2.0 - denom * inv)                          # Newton refine
        attn = e * inv                                           # (bb, N, N)

        # Full, lane-dense attention-map writeback (crop happens outside).
        attn_ref[:, h, :, :] = attn.astype(attn_ref.dtype)

        # Per-head context; heads are concatenated (no cross-head reduction).
        ctx_h = jnp.einsum('bqk,bkd->bqd', attn.astype(dt), v_h,
                           preferred_element_type=jnp.float32)   # (bb, N, hd)
        ctx_heads.append(ctx_h.astype(dt))

    # ---- single deep output projection: (bb*N, C) @ (C, C) ----
    ctx = jnp.concatenate(ctx_heads, axis=-1).reshape(bb * N, C)
    y = jnp.dot(ctx, wproj_ref[...].astype(dt),
                preferred_element_type=jnp.float32)              # (bb*N, C) f32
    y = y + bias_ref[...].astype(jnp.float32)
    out_ref[...] = y.reshape(bb, N, C).astype(out_ref.dtype)


def attention_forward(x, w_qkv, w_proj, b_proj, *, num_heads,
                      batch_block=8, cast_to_bf16=True):
    """Returns (x_out, attn_map) with the same semantics as Attention.forward
    (eval mode, qkv_bias=False, dropout p=0.0).

    cast_to_bf16=True casts MXU operands of f32 callers to bf16 (accumulation
    and softmax stay f32) for 2-4x MXU throughput; set False for exact f32.
    """
    B, N, C = x.shape
    assert C % num_heads == 0
    hd = C // num_heads
    scale = hd ** (-0.5)

    # Batch blocking: largest divisor of B that is <= batch_block.
    bb = max(d for d in range(1, min(B, batch_block) + 1) if B % d == 0)

    compute_dtype = x.dtype
    if cast_to_bf16 and x.dtype == jnp.float32:
        compute_dtype = jnp.bfloat16

    # Fused, pre-transposed QKV weight; fold the softmax scale into the Q
    # columns once here (amortized over all B//bb grid steps).
    wqkv_t = jnp.transpose(w_qkv)                                # (C, 3C)
    scale_row = jnp.concatenate(
        [jnp.full((1, C), scale, wqkv_t.dtype),
         jnp.ones((1, 2 * C), wqkv_t.dtype)], axis=1)            # (1, 3C)
    wqkv_t = wqkv_t * scale_row
    wproj_t = jnp.transpose(w_proj)                              # (C, C)
    bias = b_proj.reshape(1, C)

    if wqkv_t.dtype != compute_dtype:
        wqkv_t = wqkv_t.astype(compute_dtype)
        wproj_t = wproj_t.astype(compute_dtype)

    out, attn_full = pl.pallas_call(
        partial(_attention_kernel, num_heads=num_heads,
                compute_dtype=compute_dtype),
        out_shape=(
            jax.ShapeDtypeStruct((B, N, C), x.dtype),
            jax.ShapeDtypeStruct((B, num_heads, N, N), x.dtype),
        ),
        grid=(B // bb,),
        in_specs=[
            pl.BlockSpec((bb, N, C), lambda b: (b, 0, 0)),       # x
            pl.BlockSpec((C, 3 * C), lambda b: (0, 0)),          # fused Wqkv
            pl.BlockSpec((C, C), lambda b: (0, 0)),              # Wproj
            pl.BlockSpec((1, C), lambda b: (0, 0)),              # bias
        ],
        out_specs=(
            pl.BlockSpec((bb, N, C), lambda b: (b, 0, 0)),                 # out
            pl.BlockSpec((bb, num_heads, N, N), lambda b: (b, 0, 0, 0)),   # attn
        ),
        compiler_params=pltpu.CompilerParams(
            dimension_semantics=("parallel",),
        ),
    )(x, wqkv_t, wproj_t, bias)

    # attn[:, :, 1:, 1:] crop is done OUTSIDE the kernel so the in-kernel
    # writeback stays lane-dense (a plain XLA slice here is cheap).
    attn_map = attn_full[:, :, 1:, 1:]
    return out, attn_map


def reference_forward(x, w_qkv, w_proj, b_proj, *, num_heads):
    """Pure-JAX reference mirroring the PyTorch code line by line."""
    B, N, C = x.shape
    hd = C // num_heads
    scale = hd ** (-0.5)
    qkv = (x @ w_qkv.T).reshape(B, N, 3, num_heads, hd).transpose(2, 0, 3, 1, 4)
    q, k, v = qkv[0], qkv[1], qkv[2]
    attn = (q @ jnp.swapaxes(k, -2, -1)) * scale
    attn = jax.nn.softmax(attn, axis=-1)
    attn_map = attn[:, :, 1:, 1:]
    out = jnp.swapaxes(attn @ v, 1, 2).reshape(B, N, C)
    out = out @ w_proj.T + b_proj
    return out, attn_map


if __name__ == "__main__":
    # Small, forward-consistent shapes: dim=32, num_heads=4 (head_dim=8),
    # batch=2, sequence length N=8.
    B, N, C = 2, 8, 32
    num_heads = 4

    key = jax.random.PRNGKey(0)
    kx, kqkv, kproj, kb = jax.random.split(key, 4)

    x = jax.random.normal(kx, (B, N, C), dtype=jnp.float32)
    # Deterministic synthetic parameters (qkv_bias=False per module default).
    w_qkv = 0.05 * jax.random.normal(kqkv, (3 * C, C), dtype=jnp.float32)
    w_proj = 0.05 * jax.random.normal(kproj, (C, C), dtype=jnp.float32)
    b_proj = 0.05 * jax.random.normal(kb, (C,), dtype=jnp.float32)

    ref_out, ref_attn_map = reference_forward(x, w_qkv, w_proj, b_proj,
                                              num_heads=num_heads)

    # 1) Exact path: f32 MXU operands, tight tolerance.
    out, attn_map = attention_forward(x, w_qkv, w_proj, b_proj,
                                      num_heads=num_heads, cast_to_bf16=False)
    out = jax.block_until_ready(out)
    attn_map = jax.block_until_ready(attn_map)

    assert out.shape == (B, N, C)
    assert attn_map.shape == (B, num_heads, N - 1, N - 1)
    assert jnp.allclose(out, ref_out, atol=1e-4, rtol=1e-4)
    assert jnp.allclose(attn_map, ref_attn_map, atol=1e-4, rtol=1e-4)

    # 2) Performance path: bf16 MXU operands (f32 accumulation), looser
    #    tolerance (bf16 rounding on matmul operands).
    out_bf, attn_bf = attention_forward(x, w_qkv, w_proj, b_proj,
                                        num_heads=num_heads, cast_to_bf16=True)
    out_bf = jax.block_until_ready(out_bf)
    attn_bf = jax.block_until_ready(attn_bf)

    assert out_bf.shape == (B, N, C)
    assert attn_bf.shape == (B, num_heads, N - 1, N - 1)
    assert jnp.allclose(out_bf, ref_out, atol=3e-2, rtol=3e-2)
    assert jnp.allclose(attn_bf, ref_attn_map, atol=3e-2, rtol=3e-2)

    print("KERNEL_OK")
</pallas_src>

<mosaic_0001>
module attributes {stable_mosaic.version = 11 : i64} {
  func.func @_attention_kernel(%arg0: i32, %arg1: memref<2x8x32xf32, #tpu.memory_space<vmem>>, %arg2: memref<32x96xf32, #tpu.memory_space<vmem>>, %arg3: memref<32x32xf32, #tpu.memory_space<vmem>>, %arg4: memref<1x32xf32, #tpu.memory_space<vmem>>, %arg5: memref<2x8x32xf32, #tpu.memory_space<vmem>>, %arg6: memref<2x4x8x8xf32, #tpu.memory_space<vmem>>) attributes {dimension_semantics = [#tpu.dimension_semantics<parallel>], iteration_bounds = array<i64: 1>, scalar_prefetch = 0 : i64, scratch_operands = 0 : i64, tpu.core_type = #tpu.core_type<tc>, window_params = [{transform_indices = @transform_0, window_bounds = array<i64: 2, 8, 32>}, {pipeline_mode = #tpu.pipeline_mode<synchronous>, transform_indices = @transform_1, window_bounds = array<i64: 32, 96>}, {pipeline_mode = #tpu.pipeline_mode<synchronous>, transform_indices = @transform_2, window_bounds = array<i64: 32, 32>}, {pipeline_mode = #tpu.pipeline_mode<synchronous>, transform_indices = @transform_3, window_bounds = array<i64: 1, 32>}, {transform_indices = @transform_4, window_bounds = array<i64: 2, 8, 32>}, {transform_indices = @transform_5, window_bounds = array<i64: 2, 4, 8, 8>}]} {
    %c0 = arith.constant 0 : index
    %c0_0 = arith.constant 0 : index
    %c0_1 = arith.constant 0 : index
    %0 = vector.load %arg1[%c0, %c0_0, %c0_1] : memref<2x8x32xf32, #tpu.memory_space<vmem>>, vector<2x8x32xf32>
    %1 = vector.shape_cast %0 : vector<2x8x32xf32> to vector<16x32xf32>
    %c0_2 = arith.constant 0 : index
    %c0_3 = arith.constant 0 : index
    %2 = vector.load %arg2[%c0_2, %c0_3] : memref<32x96xf32, #tpu.memory_space<vmem>>, vector<32x96xf32>
    %cst = arith.constant dense<0.000000e+00> : vector<16x96xf32>
    %3 = tpu.matmul %1, %2, %cst {dimension_numbers = #tpu.dot_dimension_numbers<[1], [0], [0], [1], [0, 0, 1, 1], [], []>} : vector<16x32xf32>, vector<32x96xf32>, vector<16x96xf32> -> vector<16x96xf32>
    %4 = vector.extract_strided_slice %3 {offsets = [0, 0], sizes = [16, 8], strides = [1, 1]} : vector<16x96xf32> to vector<16x8xf32>
    %5 = vector.shape_cast %4 : vector<16x8xf32> to vector<2x8x8xf32>
    %6 = vector.extract_strided_slice %3 {offsets = [0, 32], sizes = [16, 8], strides = [1, 1]} : vector<16x96xf32> to vector<16x8xf32>
    %7 = vector.shape_cast %6 : vector<16x8xf32> to vector<2x8x8xf32>
    %8 = vector.extract_strided_slice %3 {offsets = [0, 64], sizes = [16, 8], strides = [1, 1]} : vector<16x96xf32> to vector<16x8xf32>
    %9 = vector.shape_cast %8 : vector<16x8xf32> to vector<2x8x8xf32>
    "tpu.trace_start"() <{level = 10 : i32, message = "bqd,bkd->bqk"}> : () -> ()
    %cst_4 = arith.constant dense<0.000000e+00> : vector<2x8x8xf32>
    %10 = tpu.matmul %5, %7, %cst_4 {dimension_numbers = #tpu.dot_dimension_numbers<[2], [2], [1], [1], [0, 0, 0, 1, 1, 1], [0], [0]>} : vector<2x8x8xf32>, vector<2x8x8xf32>, vector<2x8x8xf32> -> vector<2x8x8xf32>
    "tpu.trace_stop"() : () -> ()
    %cst_5 = arith.constant dense<0xFF800000> : vector<2x8xf32>
    %11 = vector.multi_reduction <maximumf>, %10, %cst_5 [2] : vector<2x8x8xf32> to vector<2x8xf32>
    %12 = vector.shape_cast %11 : vector<2x8xf32> to vector<2x8x1xf32>
    %13 = vector.broadcast %12 : vector<2x8x1xf32> to vector<2x8x8xf32>
    %14 = arith.subf %10, %13 : vector<2x8x8xf32>
    %15 = math.exp %14 : vector<2x8x8xf32>
    %cst_6 = arith.constant dense<0.000000e+00> : vector<2x8xf32>
    %16 = vector.multi_reduction <add>, %15, %cst_6 [2] : vector<2x8x8xf32> to vector<2x8xf32>
    %17 = vector.shape_cast %16 : vector<2x8xf32> to vector<2x8x1xf32>
    %18 = tpu.reciprocal %17 {approx = true} : vector<2x8x1xf32> -> vector<2x8x1xf32>
    %19 = arith.mulf %17, %18 : vector<2x8x1xf32>
    %cst_7 = arith.constant 2.000000e+00 : f32
    %20 = vector.broadcast %cst_7 : f32 to vector<2x8x1xf32>
    %21 = arith.subf %20, %19 : vector<2x8x1xf32>
    %22 = arith.mulf %18, %21 : vector<2x8x1xf32>
    %23 = vector.broadcast %22 : vector<2x8x1xf32> to vector<2x8x8xf32>
    %24 = arith.mulf %15, %23 : vector<2x8x8xf32>
    %c0_8 = arith.constant 0 : index
    %c0_9 = arith.constant 0 : index
    %c0_10 = arith.constant 0 : index
    %c0_11 = arith.constant 0 : index
    %25 = vector.load %arg6[%c0_8, %c0_9, %c0_10, %c0_11] : memref<2x4x8x8xf32, #tpu.memory_space<vmem>>, vector<2x1x8x8xf32>
    %26 = vector.shape_cast %25 : vector<2x1x8x8xf32> to vector<2x8x8xf32>
    %27 = vector.shape_cast %24 : vector<2x8x8xf32> to vector<2x1x8x8xf32>
    tpu.vector_store %arg6[%c0_8, %c0_9, %c0_10, %c0_11], %27 {strides = array<i32>} : memref<2x4x8x8xf32, #tpu.memory_space<vmem>>, vector<2x1x8x8xf32>,
    "tpu.trace_start"() <{level = 10 : i32, message = "bqk,bkd->bqd"}> : () -> ()
    %cst_12 = arith.constant dense<0.000000e+00> : vector<2x8x8xf32>
    %28 = tpu.matmul %24, %9, %cst_12 {dimension_numbers = #tpu.dot_dimension_numbers<[2], [1], [1], [2], [0, 0, 0, 1, 1, 2], [0], [0]>} : vector<2x8x8xf32>, vector<2x8x8xf32>, vector<2x8x8xf32> -> vector<2x8x8xf32>
    "tpu.trace_stop"() : () -> ()
    %29 = vector.extract_strided_slice %3 {offsets = [0, 8], sizes = [16, 8], strides = [1, 1]} : vector<16x96xf32> to vector<16x8xf32>
    %30 = vector.shape_cast %29 : vector<16x8xf32> to vector<2x8x8xf32>
    %31 = vector.extract_strided_slice %3 {offsets = [0, 40], sizes = [16, 8], strides = [1, 1]} : vector<16x96xf32> to vector<16x8xf32>
    %32 = vector.shape_cast %31 : vector<16x8xf32> to vector<2x8x8xf32>
    %33 = vector.extract_strided_slice %3 {offsets = [0, 72], sizes = [16, 8], strides = [1, 1]} : vector<16x96xf32> to vector<16x8xf32>
    %34 = vector.shape_cast %33 : vector<16x8xf32> to vector<2x8x8xf32>
    "tpu.trace_start"() <{level = 10 : i32, message = "bqd,bkd->bqk"}> : () -> ()
    %cst_13 = arith.constant dense<0.000000e+00> : vector<2x8x8xf32>
    %35 = tpu.matmul %30, %32, %cst_13 {dimension_numbers = #tpu.dot_dimension_numbers<[2], [2], [1], [1], [0, 0, 0, 1, 1, 1], [0], [0]>} : vector<2x8x8xf32>, vector<2x8x8xf32>, vector<2x8x8xf32> -> vector<2x8x8xf32>
    "tpu.trace_stop"() : () -> ()
    %cst_14 = arith.constant dense<0xFF800000> : vector<2x8xf32>
    %36 = vector.multi_reduction <maximumf>, %35, %cst_14 [2] : vector<2x8x8xf32> to vector<2x8xf32>
    %37 = vector.shape_cast %36 : vector<2x8xf32> to vector<2x8x1xf32>
    %38 = vector.broadcast %37 : vector<2x8x1xf32> to vector<2x8x8xf32>
    %39 = arith.subf %35, %38 : vector<2x8x8xf32>
    %40 = math.exp %39 : vector<2x8x8xf32>
    %cst_15 = arith.constant dense<0.000000e+00> : vector<2x8xf32>
    %41 = vector.multi_reduction <add>, %40, %cst_15 [2] : vector<2x8x8xf32> to vector<2x8xf32>
    %42 = vector.shape_cast %41 : vector<2x8xf32> to vector<2x8x1xf32>
    %43 = tpu.reciprocal %42 {approx = true} : vector<2x8x1xf32> -> vector<2x8x1xf32>
    %44 = arith.mulf %42, %43 : vector<2x8x1xf32>
    %cst_16 = arith.constant 2.000000e+00 : f32
    %45 = vector.broadcast %cst_16 : f32 to vector<2x8x1xf32>
    %46 = arith.subf %45, %44 : vector<2x8x1xf32>
    %47 = arith.mulf %43, %46 : vector<2x8x1xf32>
    %48 = vector.broadcast %47 : vector<2x8x1xf32> to vector<2x8x8xf32>
    %49 = arith.mulf %40, %48 : vector<2x8x8xf32>
    %c0_17 = arith.constant 0 : index
    %c1 = arith.constant 1 : index
    %c0_18 = arith.constant 0 : index
    %c0_19 = arith.constant 0 : index
    %50 = vector.load %arg6[%c0_17, %c1, %c0_18, %c0_19] : memref<2x4x8x8xf32, #tpu.memory_space<vmem>>, vector<2x1x8x8xf32>
    %51 = vector.shape_cast %50 : vector<2x1x8x8xf32> to vector<2x8x8xf32>
    %52 = vector.shape_cast %49 : vector<2x8x8xf32> to vector<2x1x8x8xf32>
    tpu.vector_store %arg6[%c0_17, %c1, %c0_18, %c0_19], %52 {strides = array<i32>} : memref<2x4x8x8xf32, #tpu.memory_space<vmem>>, vector<2x1x8x8xf32>,
    "tpu.trace_start"() <{level = 10 : i32, message = "bqk,bkd->bqd"}> : () -> ()
    %cst_20 = arith.constant dense<0.000000e+00> : vector<2x8x8xf32>
    %53 = tpu.matmul %49, %34, %cst_20 {dimension_numbers = #tpu.dot_dimension_numbers<[2], [1], [1], [2], [0, 0, 0, 1, 1, 2], [0], [0]>} : vector<2x8x8xf32>, vector<2x8x8xf32>, vector<2x8x8xf32> -> vector<2x8x8xf32>
    "tpu.trace_stop"() : () -> ()
    %54 = vector.extract_strided_slice %3 {offsets = [0, 16], sizes = [16, 8], strides = [1, 1]} : vector<16x96xf32> to vector<16x8xf32>
    %55 = vector.shape_cast %54 : vector<16x8xf32> to vector<2x8x8xf32>
    %56 = vector.extract_strided_slice %3 {offsets = [0, 48], sizes = [16, 8], strides = [1, 1]} : vector<16x96xf32> to vector<16x8xf32>
    %57 = vector.shape_cast %56 : vector<16x8xf32> to vector<2x8x8xf32>
    %58 = vector.extract_strided_slice %3 {offsets = [0, 80], sizes = [16, 8], strides = [1, 1]} : vector<16x96xf32> to vector<16x8xf32>
    %59 = vector.shape_cast %58 : vector<16x8xf32> to vector<2x8x8xf32>
    "tpu.trace_start"() <{level = 10 : i32, message = "bqd,bkd->bqk"}> : () -> ()
    %cst_21 = arith.constant dense<0.000000e+00> : vector<2x8x8xf32>
    %60 = tpu.matmul %55, %57, %cst_21 {dimension_numbers = #tpu.dot_dimension_numbers<[2], [2], [1], [1], [0, 0, 0, 1, 1, 1], [0], [0]>} : vector<2x8x8xf32>, vector<2x8x8xf32>, vector<2x8x8xf32> -> vector<2x8x8xf32>
    "tpu.trace_stop"() : () -> ()
    %cst_22 = arith.constant dense<0xFF800000> : vector<2x8xf32>
    %61 = vector.multi_reduction <maximumf>, %60, %cst_22 [2] : vector<2x8x8xf32> to vector<2x8xf32>
    %62 = vector.shape_cast %61 : vector<2x8xf32> to vector<2x8x1xf32>
    %63 = vector.broadcast %62 : vector<2x8x1xf32> to vector<2x8x8xf32>
    %64 = arith.subf %60, %63 : vector<2x8x8xf32>
    %65 = math.exp %64 : vector<2x8x8xf32>
    %cst_23 = arith.constant dense<0.000000e+00> : vector<2x8xf32>
    %66 = vector.multi_reduction <add>, %65, %cst_23 [2] : vector<2x8x8xf32> to vector<2x8xf32>
    %67 = vector.shape_cast %66 : vector<2x8xf32> to vector<2x8x1xf32>
    %68 = tpu.reciprocal %67 {approx = true} : vector<2x8x1xf32> -> vector<2x8x1xf32>
    %69 = arith.mulf %67, %68 : vector<2x8x1xf32>
    %cst_24 = arith.constant 2.000000e+00 : f32
    %70 = vector.broadcast %cst_24 : f32 to vector<2x8x1xf32>
    %71 = arith.subf %70, %69 : vector<2x8x1xf32>
    %72 = arith.mulf %68, %71 : vector<2x8x1xf32>
    %73 = vector.broadcast %72 : vector<2x8x1xf32> to vector<2x8x8xf32>
    %74 = arith.mulf %65, %73 : vector<2x8x8xf32>
    %c0_25 = arith.constant 0 : index
    %c2 = arith.constant 2 : index
    %c0_26 = arith.constant 0 : index
    %c0_27 = arith.constant 0 : index
    %75 = vector.load %arg6[%c0_25, %c2, %c0_26, %c0_27] : memref<2x4x8x8xf32, #tpu.memory_space<vmem>>, vector<2x1x8x8xf32>
    %76 = vector.shape_cast %75 : vector<2x1x8x8xf32> to vector<2x8x8xf32>
    %77 = vector.shape_cast %74 : vector<2x8x8xf32> to vector<2x1x8x8xf32>
    tpu.vector_store %arg6[%c0_25, %c2, %c0_26, %c0_27], %77 {strides = array<i32>} : memref<2x4x8x8xf32, #tpu.memory_space<vmem>>, vector<2x1x8x8xf32>,
    "tpu.trace_start"() <{level = 10 : i32, message = "bqk,bkd->bqd"}> : () -> ()
    %cst_28 = arith.constant dense<0.000000e+00> : vector<2x8x8xf32>
    %78 = tpu.matmul %74, %59, %cst_28 {dimension_numbers = #tpu.dot_dimension_numbers<[2], [1], [1], [2], [0, 0, 0, 1, 1, 2], [0], [0]>} : vector<2x8x8xf32>, vector<2x8x8xf32>, vector<2x8x8xf32> -> vector<2x8x8xf32>
    "tpu.trace_stop"() : () -> ()
    %79 = vector.extract_strided_slice %3 {offsets = [0, 24], sizes = [16, 8], strides = [1, 1]} : vector<16x96xf32> to vector<16x8xf32>
    %80 = vector.shape_cast %79 : vector<16x8xf32> to vector<2x8x8xf32>
    %81 = vector.extract_strided_slice %3 {offsets = [0, 56], sizes = [16, 8], strides = [1, 1]} : vector<16x96xf32> to vector<16x8xf32>
    %82 = vector.shape_cast %81 : vector<16x8xf32> to vector<2x8x8xf32>
    %83 = vector.extract_strided_slice %3 {offsets = [0, 88], sizes = [16, 8], strides = [1, 1]} : vector<16x96xf32> to vector<16x8xf32>
    %84 = vector.shape_cast %83 : vector<16x8xf32> to vector<2x8x8xf32>
    "tpu.trace_start"() <{level = 10 : i32, message = "bqd,bkd->bqk"}> : () -> ()
    %cst_29 = arith.constant dense<0.000000e+00> : vector<2x8x8xf32>
    %85 = tpu.matmul %80, %82, %cst_29 {dimension_numbers = #tpu.dot_dimension_numbers<[2], [2], [1], [1], [0, 0, 0, 1, 1, 1], [0], [0]>} : vector<2x8x8xf32>, vector<2x8x8xf32>, vector<2x8x8xf32> -> vector<2x8x8xf32>
    "tpu.trace_stop"() : () -> ()
    %cst_30 = arith.constant dense<0xFF800000> : vector<2x8xf32>
    %86 = vector.multi_reduction <maximumf>, %85, %cst_30 [2] : vector<2x8x8xf32> to vector<2x8xf32>
    %87 = vector.shape_cast %86 : vector<2x8xf32> to vector<2x8x1xf32>
    %88 = vector.broadcast %87 : vector<2x8x1xf32> to vector<2x8x8xf32>
    %89 = arith.subf %85, %88 : vector<2x8x8xf32>
    %90 = math.exp %89 : vector<2x8x8xf32>
    %cst_31 = arith.constant dense<0.000000e+00> : vector<2x8xf32>
    %91 = vector.multi_reduction <add>, %90, %cst_31 [2] : vector<2x8x8xf32> to vector<2x8xf32>
    %92 = vector.shape_cast %91 : vector<2x8xf32> to vector<2x8x1xf32>
    %93 = tpu.reciprocal %92 {approx = true} : vector<2x8x1xf32> -> vector<2x8x1xf32>
    %94 = arith.mulf %92, %93 : vector<2x8x1xf32>
    %cst_32 = arith.constant 2.000000e+00 : f32
    %95 = vector.broadcast %cst_32 : f32 to vector<2x8x1xf32>
    %96 = arith.subf %95, %94 : vector<2x8x1xf32>
    %97 = arith.mulf %93, %96 : vector<2x8x1xf32>
    %98 = vector.broadcast %97 : vector<2x8x1xf32> to vector<2x8x8xf32>
    %99 = arith.mulf %90, %98 : vector<2x8x8xf32>
    %c0_33 = arith.constant 0 : index
    %c3 = arith.constant 3 : index
    %c0_34 = arith.constant 0 : index
    %c0_35 = arith.constant 0 : index
    %100 = vector.load %arg6[%c0_33, %c3, %c0_34, %c0_35] : memref<2x4x8x8xf32, #tpu.memory_space<vmem>>, vector<2x1x8x8xf32>
    %101 = vector.shape_cast %100 : vector<2x1x8x8xf32> to vector<2x8x8xf32>
    %102 = vector.shape_cast %99 : vector<2x8x8xf32> to vector<2x1x8x8xf32>
    tpu.vector_store %arg6[%c0_33, %c3, %c0_34, %c0_35], %102 {strides = array<i32>} : memref<2x4x8x8xf32, #tpu.memory_space<vmem>>, vector<2x1x8x8xf32>,
    "tpu.trace_start"() <{level = 10 : i32, message = "bqk,bkd->bqd"}> : () -> ()
    %cst_36 = arith.constant dense<0.000000e+00> : vector<2x8x8xf32>
    %103 = tpu.matmul %99, %84, %cst_36 {dimension_numbers = #tpu.dot_dimension_numbers<[2], [1], [1], [2], [0, 0, 0, 1, 1, 2], [0], [0]>} : vector<2x8x8xf32>, vector<2x8x8xf32>, vector<2x8x8xf32> -> vector<2x8x8xf32>
    "tpu.trace_stop"() : () -> ()
    %104 = tpu.concatenate %28, %53, %78, %103 in 2 : vector<2x8x8xf32>, vector<2x8x8xf32>, vector<2x8x8xf32>, vector<2x8x8xf32> -> vector<2x8x32xf32>
    %105 = vector.shape_cast %104 : vector<2x8x32xf32> to vector<16x32xf32>
    %c0_37 = arith.constant 0 : index
    %c0_38 = arith.constant 0 : index
    %106 = vector.load %arg3[%c0_37, %c0_38] : memref<32x32xf32, #tpu.memory_space<vmem>>, vector<32x32xf32>
    %cst_39 = arith.constant dense<0.000000e+00> : vector<16x32xf32>
    %107 = tpu.matmul %105, %106, %cst_39 {dimension_numbers = #tpu.dot_dimension_numbers<[1], [0], [0], [1], [0, 0, 1, 1], [], []>} : vector<16x32xf32>, vector<32x32xf32>, vector<16x32xf32> -> vector<16x32xf32>
    %c0_40 = arith.constant 0 : index
    %c0_41 = arith.constant 0 : index
    %108 = vector.load %arg4[%c0_40, %c0_41] : memref<1x32xf32, #tpu.memory_space<vmem>>, vector<1x32xf32>
    %109 = vector.broadcast %108 : vector<1x32xf32> to vector<16x32xf32>
    %110 = arith.addf %107, %109 : vector<16x32xf32>
    %111 = vector.shape_cast %110 : vector<16x32xf32> to vector<2x8x32xf32>
    %c0_42 = arith.constant 0 : index
    %c0_43 = arith.constant 0 : index
    %c0_44 = arith.constant 0 : index
    %112 = vector.load %arg5[%c0_42, %c0_43, %c0_44] : memref<2x8x32xf32, #tpu.memory_space<vmem>>, vector<2x8x32xf32>
    tpu.vector_store %arg5[%c0_42, %c0_43, %c0_44], %111 {strides = array<i32>} : memref<2x8x32xf32, #tpu.memory_space<vmem>>, vector<2x8x32xf32>,
    return
  }
  func.func @transform_0(%arg0: i32) -> (i32, i32, i32) {
    %c0_i32 = arith.constant 0 : i32
    %c0_i32_0 = arith.constant 0 : i32
    %c0_i32_1 = arith.constant 0 : i32
    return %arg0, %c0_i32, %c0_i32_0 : i32, i32, i32
  }
  func.func @transform_1(%arg0: i32) -> (i32, i32) {
    %c0_i32 = arith.constant 0 : i32
    %c0_i32_0 = arith.constant 0 : i32
    %c0_i32_1 = arith.constant 0 : i32
    return %c0_i32, %c0_i32_0 : i32, i32
  }
  func.func @transform_2(%arg0: i32) -> (i32, i32) {
    %c0_i32 = arith.constant 0 : i32
    %c0_i32_0 = arith.constant 0 : i32
    %c0_i32_1 = arith.constant 0 : i32
    return %c0_i32, %c0_i32_0 : i32, i32
  }
  func.func @transform_3(%arg0: i32) -> (i32, i32) {
    %c0_i32 = arith.constant 0 : i32
    %c0_i32_0 = arith.constant 0 : i32
    %c0_i32_1 = arith.constant 0 : i32
    return %c0_i32, %c0_i32_0 : i32, i32
  }
  func.func @transform_4(%arg0: i32) -> (i32, i32, i32) {
    %c0_i32 = arith.constant 0 : i32
    %c0_i32_0 = arith.constant 0 : i32
    %c0_i32_1 = arith.constant 0 : i32
    return %arg0, %c0_i32, %c0_i32_0 : i32, i32, i32
  }
  func.func @transform_5(%arg0: i32) -> (i32, i32, i32, i32) {
    %c0_i32 = arith.constant 0 : i32
    %c0_i32_0 = arith.constant 0 : i32
    %c0_i32_1 = arith.constant 0 : i32
    %c0_i32_2 = arith.constant 0 : i32
    return %arg0, %c0_i32, %c0_i32_0, %c0_i32_1 : i32, i32, i32, i32
  }
}

</mosaic_0001>

<bundles_post_ra>
// kernel: tpu_custom_call.1
= control target key start
LH: loop header
LB: loop body
LE: loop exit
PB: predicated region body
PF: predicated region fallthrough
CT: control target
= control target key end

     0   :  { %11 = vsyncpa [#allocation3], 0  ;;  %s1193_s0 = inlined_call_operand.hbm [shape: f32[2,8,32], index: 0, kind: input, shape index: {}]   ;;  %s1194_s1 = inlined_call_operand.hbm [shape: f32[32,96], index: 1, kind: input, shape index: {}]   ;;  %s1195_s2 = inlined_call_operand.hbm [shape: f32[32,32], index: 2, kind: input, shape index: {}]   ;;  %s1196_s3 = inlined_call_operand.vmem [shape: f32[1,32], index: 3, kind: input, shape index: {}]   ;;  %s1197_s4 = inlined_call_operand.hbm [shape: f32[2,8,32], index: 4, kind: output, shape index: {0}]   ;;  %s1198_s5 = inlined_call_operand.hbm [shape: f32[2,4,8,8], index: 5, kind: output, shape index: {1}]  }
   0x1   :  { %12 = vsyncpa [#allocation6], 0 }
   0x2   :  { %13 = vsyncpa [#allocation4], 0 }
   0x3   :  { %14 = vsyncpa [#allocation10], 0  ;;  %s32_s20 = sshll.u32 %s1194_s1, 4  ;;  %s986_s21 = smov [#allocation5]   ;;  %s33_s20 = int_to_ptr.hbm [resolvable:$true] %s32_s20 }
   0x4   :  { %s34_s22 = sshll.u32 %s986_s21, 4  ;;  %s19_s25 = sshll.u32 %s1193_s0, 4  ;;  %s35_s22 = int_to_ptr.vmem [resolvable:$true] %s34_s22  ;;  %s20_s25 = int_to_ptr.hbm [resolvable:$true] %s19_s25 }
   0x5   :  { %s987_s26 = smov 128   ;;  %s988_s27 = smov 8  }
   0x6   :  { %40 = dma.hbm_to_vmem [thread:$0]  %s33_s20, 512, %s35_s22, [#allocation6], %s987_s26, %s987_s26, %s988_s27  }
   0x7   :  { %s989_s28 = smov [#allocation2]   ;;  %s45_s1 = sshll.u32 %s1195_s2, 4  ;;  %s46_s1 = int_to_ptr.hbm [resolvable:$true] %s45_s1 }
   0x8   :  { %s21_s29 = sshll.u32 %s989_s28, 4  ;;  %s990_s0 = smov [#allocation7]   ;;  %s22_s29 = int_to_ptr.vmem [resolvable:$true] %s21_s29 }
   0x9   :  { %27 = dma.hbm_to_vmem [thread:$0]  %s20_s25, 256, %s22_s29, [#allocation3], %s987_s26, %s987_s26, %s988_s27  }
   0xa   :  { %s47_s7 = sshll.u32 %s990_s0, 4  ;;  %s48_s7 = int_to_ptr.vmem [resolvable:$true] %s47_s7 }
   0xb   :  { %53 = dma.hbm_to_vmem [thread:$0]  %s46_s1, 512, %s48_s7, [#allocation6], %s987_s26, %s987_s26, %s988_s27  }
   0xc   :  { %978 = dma.done.wait [#allocation3], 256  }
   0xd   :  { %979 = vsyncadd [#allocation3], 4294967040 }
   0xe   :  { %980 = dma.done.wait [#allocation6], 1024  }
   0xf   :  { %981 = vsyncadd [#allocation6], 4294966272  ;;  %v73_v0 = vld [vmem:[#allocation5 + $0x18] sm:$0xff]  ;;  %v72_v1 = vld [vmem:[#allocation5 + $0x10] sm:$0xff]  ;;  %vm74_vm0 = vcmask 261120   ;;  %s991_s2 = smov 88  }
  0x10   :  { %93 = vmatpush.msra.mxu0 %v73_v0  ;;  %v71_v2 = vld [vmem:[#allocation5 + $0x8] sm:$0xff]  ;;  %v70_v3 = vld [vmem:[#allocation5] sm:$0xff]  ;;  %v68_v4 = vld [vmem:[#allocation2] sm:$0xff]  ;;  %s992_s8 = smov 96   ;;  %s993_s9 = smov 80   ;;  %vm107_vm1 = vcmask 64512  }
  0x11   :  { %v69_v5 = vld [vmem:[#allocation2 + $0x8] sm:$0xff]  ;;  %s994_s10 = smov 72   ;;  %s995_s11 = smov 120   ;;  %vm684_vm2 = vcmask 130048   ;;  %vm687_vm3 = vcmask 195584  }
  0x12   :  { %94 = vmatpush.msra.mxu0 %v72_v1  ;;  %s996_s12 = smov 112   ;;  %s997_s13 = smov 104  }
  0x13   :  { %s998_s14 = smov 64   ;;  %s999_s15 = smov 48  }
  0x14   :  { %95 = vmatpush.msra.mxu0 %v71_v2  ;;  %s1000_s16 = smov 40   ;;  %s1001_s17 = smov 56  }
  0x15   :  { %s1002_s18 = smov 16   ;;  %s1003_s19 = smov 24  }
  0x16   :  { %96 = vmatpush.msra.mxu0 %v70_v3  ;;  %s1004_s20 = smov [#allocation9]   ;;  %s748_s24 = sshll.u32 %s1198_s5, 4  ;;  %s749_s24 = int_to_ptr.hbm [resolvable:$true] %s748_s24 }
  0x17   :  { %767 = vmatmul.msk.f32.vlgmr.msra.gmra.mxu0 %vm74_vm0, %v68_v4  ;;  %s746_s21 = sshll.u32 %s1004_s20, 4  ;;  %s1005_s29 = smov [#allocation8]   ;;  %s747_s21 = int_to_ptr.vmem [resolvable:$true] %s746_s21 }
  0x18   :  { %s733_s30 = sshll.u32 %s1005_s29, 4  ;;  %s735_s5 = sshll.u32 %s1197_s4, 4  ;;  %s734_s30 = int_to_ptr.vmem [resolvable:$true] %s733_s30  ;;  %s736_s5 = int_to_ptr.hbm [resolvable:$true] %s735_s5 }
  0x1f   :  { %768 = vmatmul.msk.f32.gmra.mxu0 %vm74_vm0, %v69_v5 }
  0x94   :  { %v1056_v6 = vpop.f32.mrf.mxu0 }
  0x95   :  { %243 = vrot.lane.b32.xlu2 %v1056_v6, %s991_s2  ;;  %105 = vrot.lane.b32.xlu0 %v1056_v6, %s992_s8 }
  0x9c   :  { %v1060_v7 = vpop.f32.mrf.mxu0 }
  0x9d   :  { %382 = vrot.lane.b32.xlu2 %v1056_v6, %s993_s9  ;;  %271 = vrot.lane.b32.xlu1 %v1060_v7, %s991_s2  ;;  %v815_v38 = vpack.i.bf16 %v1060_v7, %v1056_v6 }
  0x9e   :  { %133 = vrot.lane.b32.xlu0 %v1060_v7, %s992_s8 }
  0xa5   :  { %521 = vrot.lane.b32.xlu2 %v1056_v6, %s994_s10  ;;  %269 = vrot.lane.b32.xlu1 %v1060_v7, %s995_s11 }
  0xa6   :  { %241 = vrot.lane.b32.xlu0 %v1056_v6, %s995_s11 }
  0xad   :  { %408 = vrot.lane.b32.xlu2 %v1060_v7, %s996_s12  ;;  %380 = vrot.lane.b32.xlu1 %v1056_v6, %s996_s12 }
  0xae   :  { %519 = vrot.lane.b32.xlu0 %v1056_v6, %s997_s13 }
  0xb5   :  { %410 = vrot.lane.b32.xlu1 %v1060_v7, %s993_s9 }
  0xb6   :  { %549 = vrot.lane.b32.xlu0 %v1060_v7, %s994_s10 }
  0xbd   :  { %547 = vrot.lane.b32.xlu1 %v1060_v7, %s997_s13 }
  0xef   :  { %v244_v8 = vpop.permute.xlu2 %243 }
  0xf7   :  { %v383_v10 = vpop.permute.xlu2 %382 }
  0xff   :  { %v522_v14 = vpop.permute.xlu2 %521 }
 0x107   :  { %v106_v9 = vpop.permute.xlu0 %105  ;;  %v409_v20 = vpop.permute.xlu2 %408 }
 0x108   :  { %769 = vmatpush.xpose.msk.msra.mxu1 %vm107_vm1, %v106_v9 }
 0x10b   :  { %770 = vmatmul.msk.f32.vlgmr.msra.gmra.mxu1 %vm107_vm1, %v1056_v6 }
 0x10c   :  { %775 = vmatpush.xpose.msk.msrb.mxu1 %vm107_vm1, %v244_v8 }
 0x10f   :  { %v272_v11 = vpop.permute.xlu1 %271 }
 0x110   :  { %v134_v12 = vpop.permute.xlu0 %133  ;;  %777 = vmatpush.xpose.msk.msra.mxu2 %vm107_vm1, %v272_v11 }
 0x111   :  { %771 = vmatpush.xpose.msk.msrb.mxu0 %vm107_vm1, %v134_v12 }
 0x114   :  { %781 = vmatpush.xpose.msk.msrb.mxu2 %vm107_vm1, %v383_v10  ;;  %772 = vmatmul.msk.f32.vlgmr.msrb.gmra.mxu0 %vm107_vm1, %v1060_v7 }
 0x117   :  { %v270_v13 = vpop.permute.xlu1 %269 }
 0x118   :  { %v242_v15 = vpop.permute.xlu0 %241  ;;  %778 = vmatmul.msk.f32.vlgmr.msra.gmra.mxu2 %vm107_vm1, %v270_v13 }
 0x119   :  { %776 = vmatmul.msk.f32.vlgmr.msrb.gmra.mxu1 %vm107_vm1, %v242_v15  ;;  %787 = vmatpush.xpose.msk.msra.mxu2 %vm107_vm1, %v522_v14 }
 0x11f   :  { %v381_v16 = vpop.permute.xlu1 %380 }
 0x120   :  { %v520_v17 = vpop.permute.xlu0 %519  ;;  %782 = vmatmul.msk.f32.vlgmr.msrb.gmra.mxu2 %vm107_vm1, %v381_v16 }
 0x127   :  { %v411_v18 = vpop.permute.xlu1 %410 }
 0x128   :  { %v550_v19 = vpop.permute.xlu0 %549  ;;  %783 = vmatpush.xpose.msk.msra.mxu0 %vm107_vm1, %v411_v18  ;;  %788 = vmatmul.msk.f32.vlgmr.msra.gmra.mxu2 %vm107_vm1, %v520_v17 }
 0x12b   :  { %784 = vmatmul.msk.f32.vlgmr.msra.gmra.mxu0 %vm107_vm1, %v409_v20 }
 0x12c   :  { %789 = vmatpush.xpose.msk.msrb.mxu0 %vm107_vm1, %v550_v19 }
 0x12f   :  { %v548_v21 = vpop.permute.xlu1 %547 }
 0x133   :  { %790 = vmatmul.msk.f32.vlgmr.msrb.gmra.mxu0 %vm107_vm1, %v548_v21 }
 0x188   :  { %v129_v22 = vpop.f32.mrf.mxu1 }
 0x189   :  { %v159_v23 = vsel %vm107_vm1, %v129_v22, -inf }
 0x18a   :  { %160 = vmax.xlane.f32.xlu2 %v159_v23 }
 0x191   :  { %v156_v24 = vpop.f32.mrf.mxu0 }
 0x192   :  { %v162_v25 = vsel %vm107_vm1, %v156_v24, -inf }
 0x193   :  { %163 = vmax.xlane.f32.xlu0 %v162_v25 }
 0x196   :  { %v266_v26 = vpop.f32.mrf.mxu1 }
 0x197   :  { %v297_v27 = vsel %vm107_vm1, %v266_v26, -inf }
 0x198   :  { %298 = vmax.xlane.f32.xlu1 %v297_v27 }
 0x19b   :  { %v294_v28 = vpop.f32.mrf.mxu2 }
 0x19c   :  { %v300_v29 = vsel %vm107_vm1, %v294_v28, -inf }
 0x19d   :  { %301 = vmax.xlane.f32.xlu2 %v300_v29 }
 0x1a3   :  { %v405_v30 = vpop.f32.mrf.mxu2 }
 0x1a4   :  { %v436_v31 = vsel %vm107_vm1, %v405_v30, -inf }
 0x1a5   :  { %437 = vmax.xlane.f32.xlu2 %v436_v31 }
 0x1a8   :  { %v433_v32 = vpop.f32.mrf.mxu0 }
 0x1a9   :  { %v439_v33 = vsel %vm107_vm1, %v433_v32, -inf }
 0x1aa   :  { %440 = vmax.xlane.f32.xlu1 %v439_v33 }
 0x1ab   :  { %v1098_v34 = vpop.f32.mrf.mxu2 }
 0x1ac   :  { %v575_v35 = vsel %vm107_vm1, %v1098_v34, -inf }
 0x1ad   :  { %576 = vmax.xlane.f32.xlu0 %v575_v35 }
 0x1b0   :  { %v1102_v36 = vpop.f32.mrf.mxu0 }
 0x1b1   :  { %v578_v37 = vsel %vm107_vm1, %v1102_v36, -inf }
 0x1b2   :  { %579 = vmax.xlane.f32.xlu2 %v578_v37 }
 0x1ca   :  { %816 = vrot.lane.b32.xlu2 %v815_v38, %s998_s14 }
 0x1fd   :  { %v161_v39 = vpop.xlane.xlu2 %160 }
 0x1fe   :  { %v165_v40 = vsub.f32 %v129_v22, %v161_v39 }
 0x200   :  { %v167_v41 = vmul.f32 1.442695, %v165_v40 }
 0x202   :  { %826 = vpow2.f32 %v167_v41 }
 0x206   :  { %v164_v42 = vpop.xlane.xlu0 %163 }
 0x207   :  { %v166_v43 = vsub.f32 %v156_v24, %v164_v42 }
 0x208   :  { %v1108_v44 = vpop.eup %826 }
 0x209   :  { %v169_v45 = vmul.f32 1.442695, %v166_v43  ;;  %v171_v46 = vsel %vm107_vm1, %v1108_v44, 0.0 }
 0x20a   :  { %172 = vadd.xlane.f32.xlu0 %v171_v46 }
 0x20b   :  { %828 = vpow2.f32 %v169_v45  ;;  %v299_v47 = vpop.xlane.xlu1 %298 }
 0x20c   :  { %v303_v48 = vsub.f32 %v266_v26, %v299_v47 }
 0x20e   :  { %v305_v49 = vmul.f32 1.442695, %v303_v48 }
 0x210   :  { %830 = vpow2.f32 %v305_v49  ;;  %v302_v50 = vpop.xlane.xlu2 %301 }
 0x211   :  { %v1112_v51 = vpop.eup %828  ;;  %v304_v52 = vsub.f32 %v294_v28, %v302_v50 }
 0x212   :  { %v174_v53 = vsel %vm107_vm1, %v1112_v51, 0.0 }
 0x213   :  { %v307_v54 = vmul.f32 1.442695, %v304_v52  ;;  %175 = vadd.xlane.f32.xlu1 %v174_v53 }
 0x215   :  { %832 = vpow2.f32 %v307_v54 }
 0x216   :  { %v1116_v55 = vpop.eup %830 }
 0x217   :  { %v309_v56 = vsel %vm107_vm1, %v1116_v55, 0.0 }
 0x218   :  { %310 = vadd.xlane.f32.xlu0 %v309_v56  ;;  %v438_v57 = vpop.xlane.xlu2 %437 }
 0x219   :  { %v442_v58 = vsub.f32 %v405_v30, %v438_v57 }
 0x21b   :  { %v444_v59 = vmul.f32 1.442695, %v442_v58  ;;  %v1120_v60 = vpop.eup %832 }
 0x21c   :  { %v312_v63 = vsel %vm107_vm1, %v1120_v60, 0.0 }
 0x21d   :  { %834 = vpow2.f32 %v444_v59  ;;  %v441_v61 = vpop.xlane.xlu1 %440 }
 0x21e   :  { %v443_v62 = vsub.f32 %v433_v32, %v441_v61 }
 0x220   :  { %v446_v0 = vmul.f32 1.442695, %v443_v62  ;;  %313 = vadd.xlane.f32.xlu0 %v312_v63  ;;  %v577_v12 = vpop.xlane.xlu0 %576 }
 0x221   :  { %v581_v14 = vsub.f32 %v1098_v34, %v577_v12 }
 0x222   :  { %836 = vpow2.f32 %v446_v0 }
 0x223   :  { %v1124_v1 = vpop.eup %834  ;;  %v583_v15 = vmul.f32 1.442695, %v581_v14 }
 0x224   :  { %v448_v2 = vsel %vm107_vm1, %v1124_v1, 0.0 }
 0x225   :  { %v580_v3 = vpop.xlane.xlu2 %579  ;;  %449 = vadd.xlane.f32.xlu1 %v448_v2 }
 0x226   :  { %v582_v11 = vsub.f32 %v1102_v36, %v580_v3 }
 0x228   :  { %v1128_v4 = vpop.eup %836  ;;  %v585_v13 = vmul.f32 1.442695, %v582_v11 }
 0x229   :  { %v451_v5 = vsel %vm107_vm1, %v1128_v4, 0.0 }
 0x22a   :  { %452 = vadd.xlane.f32.xlu2 %v451_v5  ;;  %838 = vpow2.f32 %v585_v13 }
 0x22b   :  { %840 = vpow2.f32 %v583_v15 }
 0x22d   :  { %v817_v8 = vpop.permute.xlu2 %816 }
 0x22e   :  { %v818_v9 = vunpack.i.l.bf16 %v817_v8  ;;  %v819_v10 = vunpack.i.h.bf16 %v817_v8 }
 0x230   :  { %210 = vmatpush.msra.mxu3 %v818_v9  ;;  %v1137_v16 = vpop.eup %838 }
 0x231   :  { %v590_v17 = vsel %vm107_vm1, %v1137_v16, 0.0 }
 0x232   :  { %236 = vmatpush.msrb.mxu3 %v819_v10 }
 0x234   :  { %467 = vrot.lane.b32.xlu0 %v1056_v6, %s999_s15 }
 0x23c   :  { %606 = vrot.lane.b32.xlu0 %v1056_v6, %s1000_s16  ;;  %v1141_v6 = vpop.eup %840 }
 0x23d   :  { %v587_v18 = vsel %vm107_vm1, %v1141_v6, 0.0 }
 0x23e   :  { %821 = vrot.lane.b32.xlu1 %v815_v38, %s1001_s17 }
 0x244   :  { %493 = vrot.lane.b32.xlu0 %v1060_v7, %s999_s15 }
 0x268   :  { %591 = vadd.xlane.f32.xlu1 %v590_v17 }
 0x26e   :  { %588 = vadd.xlane.f32.xlu0 %v587_v18  ;;  %v693_v18 = vld [vmem:[#allocation7 + $0x18] sm:$0xff] }
 0x26f   :  { %716 = vmatpush.msrb.mxu2 %v693_v18 }
 0x27d   :  { %v173_v19 = vpop.xlane.xlu0 %172 }
 0x27e   :  { %842 = vrcp.f32 %v173_v19 }
 0x282   :  { %632 = vrot.lane.b32.xlu0 %v1060_v7, %s1000_s16 }
 0x284   :  { %v843_v20 = vpop.eup %842 }
 0x285   :  { %v179_v21 = vmul.f32 %v843_v20, %v173_v19  ;;  %v692_v19 = vld [vmem:[#allocation7 + $0x10] sm:$0xff] }
 0x286   :  { %v176_v22 = vpop.xlane.xlu1 %175  ;;  %717 = vmatpush.msrb.mxu2 %v692_v19 }
 0x287   :  { %v181_v23 = vsub.f32 2.0, %v179_v21  ;;  %844 = vrcp.f32 %v176_v22  ;;  %v690_v21 = vld [vmem:[#allocation7] sm:$0xff] }
 0x289   :  { %v183_v24 = vmul.f32 %v843_v20, %v181_v23  ;;  %v691_v20 = vld [vmem:[#allocation7 + $0x8] sm:$0xff] }
 0x28a   :  { %718 = vmatpush.msrb.mxu2 %v691_v20 }
 0x28b   :  { %v311_v25 = vpop.xlane.xlu0 %310  ;;  %v185_v26 = vmul.f32 %v1108_v44, %v183_v24 }
 0x28c   :  { %846 = vrcp.f32 %v311_v25  ;;  %719 = vmatpush.msrb.mxu2 %v690_v21 }
 0x28d   :  { %v845_v27 = vpop.eup %844  ;;  %187 = vst.msk [vmem:[#allocation9] sm:$0xff] %vm107_vm1, %v185_v26  ;;  %773 = vmatmul.msk.f32.vlgmr.msra.gmra.mxu3 %vm107_vm1, %v185_v26 }
 0x28e   :  { %v180_v28 = vmul.f32 %v845_v27, %v176_v22 }
 0x290   :  { %v182_v29 = vsub.f32 2.0, %v180_v28 }
 0x292   :  { %v847_v30 = vpop.eup %846  ;;  %v184_v31 = vmul.f32 %v845_v27, %v182_v29 }
 0x293   :  { %v317_v7 = vmul.f32 %v847_v30, %v311_v25  ;;  %v314_v32 = vpop.xlane.xlu0 %313 }
 0x294   :  { %v186_v33 = vmul.f32 %v1112_v51, %v184_v31  ;;  %848 = vrcp.f32 %v314_v32 }
 0x295   :  { %v319_v34 = vsub.f32 2.0, %v317_v7 }
 0x296   :  { %188 = vst.msk [vmem:[#allocation9 + $0x20] sm:$0xff] %vm107_vm1, %v186_v33  ;;  %774 = vmatmul.msk.f32.vlgmr.msrb.gmra.mxu3 %vm107_vm1, %v186_v33  ;;  %v825_v33 = vld [vmem:[%s1196_s3] ss:$0 sm:$0xff] }
 0x297   :  { %v321_v35 = vmul.f32 %v847_v30, %v319_v34 }
 0x298   :  { %v450_v36 = vpop.xlane.xlu1 %449 }
 0x299   :  { %v323_v37 = vmul.f32 %v1116_v55, %v321_v35  ;;  %850 = vrcp.f32 %v450_v36 }
 0x29a   :  { %v849_v38 = vpop.eup %848 }
 0x29b   :  { %326 = vst.msk [vmem:[#allocation9 + $0x8] sm:$0xff] %vm107_vm1, %v323_v37  ;;  %v318_v39 = vmul.f32 %v849_v38, %v314_v32 }
 0x29d   :  { %v320_v40 = vsub.f32 2.0, %v318_v39  ;;  %v453_v41 = vpop.xlane.xlu2 %452 }
 0x29e   :  { %852 = vrcp.f32 %v453_v41 }
 0x29f   :  { %v851_v42 = vpop.eup %850  ;;  %v322_v43 = vmul.f32 %v849_v38, %v320_v40 }
 0x2a0   :  { %v456_v44 = vmul.f32 %v851_v42, %v450_v36 }
 0x2a1   :  { %v324_v45 = vmul.f32 %v1120_v60, %v322_v43 }
 0x2a2   :  { %v458_v46 = vsub.f32 2.0, %v456_v44 }
 0x2a3   :  { %327 = vst.msk [vmem:[#allocation9 + $0x28] sm:$0xff] %vm107_vm1, %v324_v45 }
 0x2a4   :  { %v853_v47 = vpop.eup %852  ;;  %v460_v48 = vmul.f32 %v851_v42, %v458_v46 }
 0x2a5   :  { %v457_v49 = vmul.f32 %v853_v47, %v453_v41 }
 0x2a6   :  { %v462_v50 = vmul.f32 %v1124_v1, %v460_v48  ;;  %v468_v51 = vpop.permute.xlu0 %467 }
 0x2a7   :  { %v459_v52 = vsub.f32 2.0, %v457_v49 }
 0x2a8   :  { %465 = vst.msk [vmem:[#allocation9 + $0x10] sm:$0xff] %vm107_vm1, %v462_v50 }
 0x2a9   :  { %v461_v53 = vmul.f32 %v853_v47, %v459_v52 }
 0x2ab   :  { %v463_v54 = vmul.f32 %v1128_v4, %v461_v53 }
 0x2ad   :  { %466 = vst.msk [vmem:[#allocation9 + $0x30] sm:$0xff] %vm107_vm1, %v463_v54 }
 0x2ae   :  { %v607_v55 = vpop.permute.xlu0 %606 }
 0x2b0   :  { %v822_v56 = vpop.permute.xlu1 %821 }
 0x2b1   :  { %v824_v57 = vunpack.i.h.bf16 %v822_v56  ;;  %v823_v58 = vunpack.i.l.bf16 %v822_v56 }
 0x2b3   :  { %349 = vmatpush.msra.mxu3 %v823_v58  ;;  %375 = vmatpush.msra.mxu1 %v824_v57 }
 0x2b4   :  { %779 = vmatmul.msk.f32.vlgmr.msra.gmra.mxu3 %vm107_vm1, %v323_v37  ;;  %780 = vmatmul.msk.f32.vlgmr.msra.gmra.mxu1 %vm107_vm1, %v324_v45 }
 0x2b5   :  { %488 = vmatpush.msrb.mxu3 %v468_v51 }
 0x2b6   :  { %v494_v59 = vpop.permute.xlu0 %493 }
 0x2b7   :  { %627 = vmatpush.msra.mxu3 %v607_v55  ;;  %514 = vmatpush.msrb.mxu1 %v494_v59 }
 0x2bc   :  { %785 = vmatmul.msk.f32.vlgmr.msrb.gmra.mxu3 %vm107_vm1, %v462_v50  ;;  %786 = vmatmul.msk.f32.vlgmr.msrb.gmra.mxu1 %vm107_vm1, %v463_v54 }
 0x2db   :  { %v592_v60 = vpop.xlane.xlu1 %591 }
 0x2dc   :  { %854 = vrcp.f32 %v592_v60 }
 0x2e1   :  { %v589_v61 = vpop.xlane.xlu0 %588 }
 0x2e2   :  { %v855_v62 = vpop.eup %854  ;;  %856 = vrcp.f32 %v589_v61 }
 0x2e3   :  { %v596_v63 = vmul.f32 %v855_v62, %v592_v60 }
 0x2e5   :  { %v598_v0 = vsub.f32 2.0, %v596_v63 }
 0x2e7   :  { %v600_v1 = vmul.f32 %v855_v62, %v598_v0 }
 0x2e8   :  { %v857_v2 = vpop.eup %856 }
 0x2e9   :  { %v602_v3 = vmul.f32 %v1137_v16, %v600_v1  ;;  %v595_v4 = vmul.f32 %v857_v2, %v589_v61 }
 0x2eb   :  { %605 = vst.msk [vmem:[#allocation9 + $0x38] sm:$0xff] %vm107_vm1, %v602_v3  ;;  %v597_v5 = vsub.f32 2.0, %v595_v4 }
 0x2ed   :  { %v599_v8 = vmul.f32 %v857_v2, %v597_v5 }
 0x2ef   :  { %v601_v9 = vmul.f32 %v1141_v6, %v599_v8 }
 0x2f1   :  { %604 = vst.msk [vmem:[#allocation9 + $0x18] sm:$0xff] %vm107_vm1, %v601_v9  ;;  %791 = vmatmul.msk.f32.vlgmr.msra.gmra.mxu3 %vm107_vm1, %v601_v9 }
 0x2f2   :  { %754 = dma.vmem_to_hbm [thread:$0]  %s747_s21, 1024, %s749_s24, [#allocation10], %s987_s26, %s987_s26, %s988_s27  }
 0x2f4   :  { %v633_v10 = vpop.permute.xlu0 %632 }
 0x2f5   :  { %653 = vmatpush.msra.mxu1 %v633_v10 }
 0x2f6   :  { %792 = vmatmul.msk.f32.vlgmr.msra.gmra.mxu1 %vm107_vm1, %v602_v3 }
 0x310   :  { %v212_v11 = vpop.f32.mrf.mxu3 }
 0x319   :  { %v238_v12 = vpop.f32.mrf.mxu3 }
 0x331   :  { %v377_v15 = vpop.f32.mrf.mxu1 }
 0x337   :  { %v351_v13 = vpop.f32.mrf.mxu3 }
 0x338   :  { %660 = vrot.lane.b32.xlu2 %v351_v13, %s988_s27 }
 0x339   :  { %v516_v16 = vpop.f32.mrf.mxu1 }
 0x33f   :  { %v490_v14 = vpop.f32.mrf.mxu3 }
 0x340   :  { %668 = vrot.lane.b32.xlu0 %v490_v14, %s1002_s18 }
 0x348   :  { %662 = vrot.lane.b32.xlu0 %v377_v15, %s988_s27 }
 0x350   :  { %670 = vrot.lane.b32.xlu0 %v516_v16, %s1002_s18 }
 0x373   :  { %v655_v17 = vpop.f32.mrf.mxu1 }
 0x374   :  { %v629_v6 = vpop.f32.mrf.mxu3  ;;  %678 = vrot.lane.b32.xlu2 %v655_v17, %s1003_s19 }
 0x375   :  { %676 = vrot.lane.b32.xlu1 %v629_v6, %s1003_s19 }
 0x392   :  { %v661_v24 = vpop.permute.xlu2 %660 }
 0x393   :  { %v682_v25 = vsel %vm107_vm1, %v212_v11, %v661_v24 }
 0x3b2   :  { %v669_v22 = vpop.permute.xlu0 %668 }
 0x3b3   :  { %v685_v26 = vsel %vm684_vm2, %v682_v25, %v669_v22 }
 0x3ba   :  { %v663_v23 = vpop.permute.xlu0 %662 }
 0x3bb   :  { %v683_v31 = vsel %vm107_vm1, %v238_v12, %v663_v23 }
 0x3c2   :  { %v671_v29 = vpop.permute.xlu0 %670 }
 0x3c3   :  { %v686_v7 = vsel %vm684_vm2, %v683_v31, %v671_v29 }
 0x3ce   :  { %v679_v30 = vpop.permute.xlu2 %678 }
 0x3cf   :  { %v689_v32 = vsel %vm687_vm3, %v686_v7, %v679_v30 }
 0x3e7   :  { %v677_v27 = vpop.permute.xlu1 %676 }
 0x3e8   :  { %v688_v28 = vsel %vm687_vm3, %v685_v26, %v677_v27 }
 0x3e9   :  { %793 = vmatmul.msk.f32.vlgmr.msrb.gmra.mxu2 %vm74_vm0, %v688_v28 }
 0x3f1   :  { %794 = vmatmul.msk.f32.gmra.mxu2 %vm74_vm0, %v689_v32 }
 0x46c   :  { %v721_v34 = vpop.f32.mrf.mxu2 }
 0x46d   :  { %v722_v35 = vadd.f32 %v825_v33, %v721_v34 }
 0x46f   :  { %727 = vst.msk [vmem:[#allocation8] sm:$0xff] %vm74_vm0, %v722_v35 }
 0x474   :  { %v724_v36 = vpop.f32.mrf.mxu2 }
 0x475   :  { %v725_v37 = vadd.f32 %v825_v33, %v724_v36 }
 0x477   :  { %728 = vst.msk [vmem:[#allocation8 + $0x8] sm:$0xff] %vm74_vm0, %v725_v37 }
 0x478   :  { %741 = dma.vmem_to_hbm [thread:$0]  %s734_s30, 256, %s736_s5, [#allocation4], %s987_s26, %s987_s26, %s988_s27  }
 0x479   :  { %982 = dma.done.wait [#allocation4], 256  }
 0x47a   :  { %983 = vsyncadd [#allocation4], 4294967040 }
 0x47b   :  { %984 = dma.done.wait [#allocation10], 1024  }
 0x47c   :  { %985 = vsyncadd [#allocation10], 4294966272 }
 0x47d   :  { %763 = vsyncpa [#allocation3], 1 }
 0x47e   :  { %764 = vsyncpa [#allocation6], 1 }
 0x47f   :  { %765 = vsyncpa [#allocation4], 1 }
 0x480   :  { %766 = vsyncpa [#allocation10], 1 }

</bundles_post_ra>
